<compile_context>
chip_gen: v7x
topology: tpu7x:2x2x1
jax: 0.10.0
libtpu: 0.0.40
codegen_flags: <defaults>
</compile_context>

<pallas_src>
import functools

import jax
import jax.numpy as jnp
from jax import lax
from jax.experimental import pallas as pl
from jax.experimental.pallas import tpu as pltpu


# --------------------------------------------------------------------------------------
# VMEM budgeting / tile-size helpers (per TPU generation)
# --------------------------------------------------------------------------------------
def _round_up(x, m):
    return (x + m - 1) // m * m


def _vmem_capacity_bytes():
    try:
        info = pltpu.get_tpu_info()
        cap = getattr(info, "vmem_capacity_bytes", None)
        if cap:
            return int(cap)
    except Exception:
        pass
    return 64 * 1024 * 1024   # conservative fallback = v7x per-TensorCore VMEM


def _pick_res_tile(n_res, c_z, out_bytes, budget_bytes):
    """Largest i/j tile (multiple of 8 dividing n_res, or n_res itself) whose pair-kernel
    live set fits the VMEM budget. Never falls back to an oversized full-extent block
    when an aligned divisor exists."""
    cands = {n_res}
    for t in range(8, min(n_res, 256) + 1, 8):
        if n_res % t == 0:
            cands.add(t)

    czp = _round_up(c_z, 128)

    def live_bytes(t):
        return (2 * t * t * czp * out_bytes      # double-buffered output block
                + t * t * czp * 4                # relpos accumulator (f32)
                + t * t * czp * 4                # epilogue temporary (f32)
                + t * t * 128 * 2)               # bf16 one-hot (num_bins lane-padded)

    fitting = [t for t in cands if live_bytes(t) <= budget_bytes]
    if fitting:
        return max(fitting)
    return min(cands)


def _pick_cluster_tile(n_clust, n_res, msa_dim, c_m, out_bytes, budget_bytes):
    """Largest cluster pack (divisor of n_clust) whose double-buffered input+output MSA
    blocks (with lane padding) fit the budget -> big MXU M-dim, fewer grid steps."""
    in_row = _round_up(msa_dim, 128) * 4
    out_row = _round_up(c_m, 128) * out_bytes

    def block_bytes(sc):
        return 2 * sc * n_res * (in_row + out_row)

    best = 1
    for sc in range(1, n_clust + 1):
        if n_clust % sc == 0 and block_bytes(sc) <= budget_bytes:
            best = sc
    return best


# --------------------------------------------------------------------------------------
# Kernels
# --------------------------------------------------------------------------------------
def _msa_embedding_kernel(msa_ref, tf_ref, wm_ref, bm_ref, wtfm_ref, btfm_ref, out_ref,
                          *, sc, n_res, msa_dim, c_m):
    """msa_emb[b, s:s+sc] = msa_feat @ W_msa^T + b_msa + (tf @ W_m^T + b_m)."""
    # bf16 operands on the MXU, f32 accumulation (memory-bound kernel; MXU is hidden).
    msa = msa_ref[0].reshape(sc * n_res, msa_dim).astype(jnp.bfloat16)
    l1 = jnp.dot(msa, wm_ref[...], preferred_element_type=jnp.float32) + bm_ref[...]
    # tf->m recomputed per tile: tiny (n_res x tf_dim x c_m) f32 matmul, fully hidden.
    tf_m = jnp.dot(tf_ref[0], wtfm_ref[...], preferred_element_type=jnp.float32) + btfm_ref[...]
    out_ref[0] = (l1.reshape(sc, n_res, c_m) + tf_m[None]).astype(out_ref.dtype)


def _pair_embedding_kernel(ri_row_ref, ri_col_ref, tfi_ref, tfj_ref,
                           wzi_ref, bzi_ref, wzj_ref, bzj_ref, wr_ref, br_ref,
                           out_ref, *, relpos_k, num_bins, c_z, t_res):
    """pair tile = one_hot(clip(d)) @ W_relpos^T + b_relpos + emb_i[:,None] + emb_j[None,:]."""
    i = pl.program_id(1)
    j = pl.program_id(2)
    off_i = i * t_res
    off_j = j * t_res
    if t_res % 8 == 0:
        off_i = pl.multiple_of(off_i, 8)
        off_j = pl.multiple_of(off_j, 8)

    # residue_index stays int32: exact binning (matches argmin-nearest-bin for integer
    # indices), no float-equality / low-precision hazard. Rows are tiny; the full per-batch
    # row is kept resident and the tile is sliced here so BlockSpecs stay (8,128)-legal.
    ri_i = ri_col_ref[0, pl.ds(off_i, t_res), :]          # (t_res, 1) int32
    ri_j = ri_row_ref[0, :, pl.ds(off_j, t_res)]          # (1, t_res) int32
    d = ri_i - ri_j                                       # (t_res, t_res)
    idx = jnp.clip(d, -relpos_k, relpos_k) + relpos_k     # in [0, num_bins)

    # One-hot via broadcast iota compare (no big iota materialized), then one bf16 MXU
    # matmul with f32 accumulation.
    bins = lax.broadcasted_iota(jnp.int32, (1, 1, num_bins), 2)
    one_hot = (idx[:, :, None] == bins).astype(jnp.bfloat16)          # (t, t, num_bins)
    relpos = jnp.dot(one_hot.reshape(t_res * t_res, num_bins), wr_ref[...],
                     preferred_element_type=jnp.float32).reshape(t_res, t_res, c_z)

    # tf->z_i / tf->z_j recomputed per tile (t_res x tf_dim x c_z f32 matmuls, hidden
    # under the tile writeback) -- no separate pallas_call, no HBM round trip.
    emb_i = jnp.dot(tfi_ref[0], wzi_ref[...], preferred_element_type=jnp.float32) + bzi_ref[...]
    emb_j = jnp.dot(tfj_ref[0], wzj_ref[...], preferred_element_type=jnp.float32) + bzj_ref[...]

    # Epilogue adds in f32 (v5e-safe), single cast at the store (bf16 store if model dtype
    # is bf16 -> halved writeback bytes on the store-bound path).
    pair = relpos + br_ref[...][None] + emb_i[:, None, :] + emb_j[None, :, :]
    out_ref[0] = pair.astype(out_ref.dtype)


# --------------------------------------------------------------------------------------
# Wrapper
# --------------------------------------------------------------------------------------
def input_embedder_forward(target_feat, residue_index, msa_feat, params, relpos_k):
    B, n_res, tf_dim = target_feat.shape
    _, n_clust, _, msa_dim = msa_feat.shape
    c_m = params["linear_msa_m_w"].shape[0]
    c_z = params["linear_tf_z_i_w"].shape[0]
    num_bins = 2 * relpos_k + 1
    out_dtype = target_feat.dtype
    out_bytes = target_feat.dtype.itemsize

    # Per-generation VMEM budgets (128 MiB on v5e/v6e, 64 MiB per TC on v7x).
    vmem_cap = _vmem_capacity_bytes()
    vmem_limit = max(32 * 1024 * 1024, min((vmem_cap * 3) // 4, 96 * 1024 * 1024))
    pair_budget = (vmem_limit * 7) // 10
    msa_budget = vmem_limit // 3

    # Weights to [in, out]; the two big matmul weights in bf16 (MXU-native everywhere,
    # f32 accumulation keeps error ~1e-3, well inside tolerance); biases as [1, out] f32.
    wzi = params["linear_tf_z_i_w"].T
    bzi = params["linear_tf_z_i_b"][None]
    wzj = params["linear_tf_z_j_w"].T
    bzj = params["linear_tf_z_j_b"][None]
    wtfm = params["linear_tf_m_w"].T
    btfm = params["linear_tf_m_b"][None]
    wmsa = params["linear_msa_m_w"].T.astype(jnp.bfloat16)      # (msa_dim, c_m)
    bmsa = params["linear_msa_m_b"][None]
    wr = params["linear_relpos_w"].T.astype(jnp.bfloat16)       # (num_bins, c_z)
    br = params["linear_relpos_b"][None]

    # ---- MSA embedding: pack `sc` clusters per grid step (M = sc*n_res rows on the MXU);
    # tf->m fused into the same kernel.
    sc = _pick_cluster_tile(n_clust, n_res, msa_dim, c_m, out_bytes, msa_budget)
    msa_emb = pl.pallas_call(
        functools.partial(_msa_embedding_kernel, sc=sc, n_res=n_res,
                          msa_dim=msa_dim, c_m=c_m),
        out_shape=jax.ShapeDtypeStruct((B, n_clust, n_res, c_m), out_dtype),
        grid=(B, n_clust // sc),
        in_specs=[
            pl.BlockSpec((1, sc, n_res, msa_dim), lambda b, s: (b, s, 0, 0)),
            pl.BlockSpec((1, n_res, tf_dim), lambda b, s: (b, 0, 0)),
            pl.BlockSpec((msa_dim, c_m), lambda b, s: (0, 0)),
            pl.BlockSpec((1, c_m), lambda b, s: (0, 0)),
            pl.BlockSpec((tf_dim, c_m), lambda b, s: (0, 0)),
            pl.BlockSpec((1, c_m), lambda b, s: (0, 0)),
        ],
        out_specs=pl.BlockSpec((1, sc, n_res, c_m), lambda b, s: (b, s, 0, 0)),
        compiler_params=pltpu.CompilerParams(
            dimension_semantics=("parallel", "parallel"),
            vmem_limit_bytes=vmem_limit),
    )(msa_feat, target_feat, wmsa, bmsa, wtfm, btfm)

    # ---- Pair embedding tiled over (batch, i-tile, j-tile); tf projections recomputed
    # per tile; residue_index int32 end to end.
    t_res = _pick_res_tile(n_res, c_z, out_bytes, pair_budget)
    n_tiles = n_res // t_res
    ri = residue_index.astype(jnp.int32)
    ri_row = ri[:, None, :]      # [B, 1, N]  (j axis on lanes)
    ri_col = ri[:, :, None]      # [B, N, 1]  (i axis on sublanes)

    pair_emb = pl.pallas_call(
        functools.partial(_pair_embedding_kernel, relpos_k=relpos_k,
                          num_bins=num_bins, c_z=c_z, t_res=t_res),
        out_shape=jax.ShapeDtypeStruct((B, n_res, n_res, c_z), out_dtype),
        grid=(B, n_tiles, n_tiles),
        in_specs=[
            # Full residue-index rows per batch (tiny, kept resident across i/j tiles).
            pl.BlockSpec((1, 1, n_res), lambda b, i, j: (b, 0, 0)),
            pl.BlockSpec((1, n_res, 1), lambda b, i, j: (b, 0, 0)),
            # target_feat rows for the i-tile and the j-tile.
            pl.BlockSpec((1, t_res, tf_dim), lambda b, i, j: (b, i, 0)),
            pl.BlockSpec((1, t_res, tf_dim), lambda b, i, j: (b, j, 0)),
            pl.BlockSpec((tf_dim, c_z), lambda b, i, j: (0, 0)),
            pl.BlockSpec((1, c_z), lambda b, i, j: (0, 0)),
            pl.BlockSpec((tf_dim, c_z), lambda b, i, j: (0, 0)),
            pl.BlockSpec((1, c_z), lambda b, i, j: (0, 0)),
            pl.BlockSpec((num_bins, c_z), lambda b, i, j: (0, 0)),
            pl.BlockSpec((1, c_z), lambda b, i, j: (0, 0)),
        ],
        out_specs=pl.BlockSpec((1, t_res, t_res, c_z), lambda b, i, j: (b, i, j, 0)),
        compiler_params=pltpu.CompilerParams(
            dimension_semantics=("parallel", "parallel", "parallel"),
            vmem_limit_bytes=vmem_limit),
    )(ri_row, ri_col, target_feat, target_feat, wzi, bzi, wzj, bzj, wr, br)

    return msa_emb, pair_emb


# --------------------------------------------------------------------------------------
# Pure-JAX reference (mirrors the PyTorch eager functions exactly)
# --------------------------------------------------------------------------------------
def reference_forward(target_feat, residue_index, msa_feat, params, relpos_k):
    p = params
    l1 = msa_feat @ p["linear_msa_m_w"].T + p["linear_msa_m_b"]
    l2 = target_feat @ p["linear_tf_m_w"].T + p["linear_tf_m_b"]
    msa_emb = l1 + l2[:, None, :, :]

    tf_i = target_feat @ p["linear_tf_z_i_w"].T + p["linear_tf_z_i_b"]
    tf_j = target_feat @ p["linear_tf_z_j_w"].T + p["linear_tf_z_j_b"]
    ri = residue_index.astype(target_feat.dtype)
    bins = jnp.arange(-relpos_k, relpos_k + 1, dtype=ri.dtype)
    d = ri[:, :, None] - ri[:, None, :]
    idx = jnp.argmin(jnp.abs(d[..., None] - bins), axis=-1)
    one_hot = jax.nn.one_hot(idx, 2 * relpos_k + 1, dtype=ri.dtype)
    relpos = one_hot @ p["linear_relpos_w"].T + p["linear_relpos_b"]
    pair_emb = relpos + tf_i[:, :, None, :] + tf_j[:, None, :, :]
    return msa_emb, pair_emb


# --------------------------------------------------------------------------------------
# Deterministic parameter init (PyTorch convention: weight [out, in], bias [out])
# --------------------------------------------------------------------------------------
def init_params(key, tf_dim, msa_dim, c_z, c_m, relpos_k):
    num_bins = 2 * relpos_k + 1
    keys = jax.random.split(key, 10)

    def lin(kw, kb, out_d, in_d):
        w = 0.1 * jax.random.normal(kw, (out_d, in_d), jnp.float32)
        b = 0.1 * jax.random.normal(kb, (out_d,), jnp.float32)
        return w, b

    p = {}
    p["linear_tf_z_i_w"], p["linear_tf_z_i_b"] = lin(keys[0], keys[1], c_z, tf_dim)
    p["linear_tf_z_j_w"], p["linear_tf_z_j_b"] = lin(keys[2], keys[3], c_z, tf_dim)
    p["linear_tf_m_w"], p["linear_tf_m_b"] = lin(keys[4], keys[5], c_m, tf_dim)
    p["linear_msa_m_w"], p["linear_msa_m_b"] = lin(keys[6], keys[7], c_m, msa_dim)
    p["linear_relpos_w"], p["linear_relpos_b"] = lin(keys[8], keys[9], c_z, num_bins)
    return p


# --------------------------------------------------------------------------------------
if __name__ == "__main__":
    # Small shapes consistent with the module's forward signature.
    B, N_clust, N_res = 2, 4, 16
    tf_dim, msa_dim = 22, 49
    c_z, c_m, relpos_k = 32, 32, 4

    key = jax.random.PRNGKey(0)
    k_tf, k_msa, k_params = jax.random.split(key, 3)

    target_feat = jax.random.normal(k_tf, (B, N_res, tf_dim), jnp.float32)
    msa_feat = jax.random.normal(k_msa, (B, N_clust, N_res, msa_dim), jnp.float32)
    residue_index = jnp.tile(jnp.arange(N_res, dtype=jnp.int32)[None, :], (B, 1))

    params = init_params(k_params, tf_dim, msa_dim, c_z, c_m, relpos_k)

    msa_emb, pair_emb = input_embedder_forward(
        target_feat, residue_index, msa_feat, params, relpos_k)
    jax.block_until_ready((msa_emb, pair_emb))

    msa_ref, pair_ref = reference_forward(
        target_feat, residue_index, msa_feat, params, relpos_k)

    assert msa_emb.shape == (B, N_clust, N_res, c_m)
    assert pair_emb.shape == (B, N_res, N_res, c_z)
    assert jnp.allclose(msa_emb, msa_ref, atol=2e-2, rtol=2e-2)
    assert jnp.allclose(pair_emb, pair_ref, atol=2e-2, rtol=2e-2)

    print("KERNEL_OK")
</pallas_src>

<mosaic_0001>
module attributes {stable_mosaic.version = 11 : i64} {
  func.func @_msa_embedding_kernel(%arg0: i32, %arg1: i32, %arg2: memref<1x4x16x49xf32, #tpu.memory_space<vmem>>, %arg3: memref<1x16x22xf32, #tpu.memory_space<vmem>>, %arg4: memref<49x32xbf16, #tpu.memory_space<vmem>>, %arg5: memref<1x32xf32, #tpu.memory_space<vmem>>, %arg6: memref<22x32xf32, #tpu.memory_space<vmem>>, %arg7: memref<1x32xf32, #tpu.memory_space<vmem>>, %arg8: memref<1x4x16x32xf32, #tpu.memory_space<vmem>>) attributes {dimension_semantics = [#tpu.dimension_semantics<parallel>, #tpu.dimension_semantics<parallel>], iteration_bounds = array<i64: 2, 1>, scalar_prefetch = 0 : i64, scratch_operands = 0 : i64, tpu.core_type = #tpu.core_type<tc>, window_params = [{transform_indices = @transform_0, window_bounds = array<i64: 1, 4, 16, 49>}, {transform_indices = @transform_1, window_bounds = array<i64: 1, 16, 22>}, {pipeline_mode = #tpu.pipeline_mode<synchronous>, transform_indices = @transform_2, window_bounds = array<i64: 49, 32>}, {pipeline_mode = #tpu.pipeline_mode<synchronous>, transform_indices = @transform_3, window_bounds = array<i64: 1, 32>}, {pipeline_mode = #tpu.pipeline_mode<synchronous>, transform_indices = @transform_4, window_bounds = array<i64: 22, 32>}, {pipeline_mode = #tpu.pipeline_mode<synchronous>, transform_indices = @transform_5, window_bounds = array<i64: 1, 32>}, {transform_indices = @transform_6, window_bounds = array<i64: 1, 4, 16, 32>}]} {
    %c0 = arith.constant 0 : index
    %c0_0 = arith.constant 0 : index
    %c0_1 = arith.constant 0 : index
    %c0_2 = arith.constant 0 : index
    %0 = vector.load %arg2[%c0, %c0_0, %c0_1, %c0_2] : memref<1x4x16x49xf32, #tpu.memory_space<vmem>>, vector<1x4x16x49xf32>
    %1 = vector.shape_cast %0 : vector<1x4x16x49xf32> to vector<4x16x49xf32>
    %2 = vector.shape_cast %1 : vector<4x16x49xf32> to vector<64x49xf32>
    %3 = arith.truncf %2 : vector<64x49xf32> to vector<64x49xbf16>
    %c0_3 = arith.constant 0 : index
    %c0_4 = arith.constant 0 : index
    %4 = vector.load %arg4[%c0_3, %c0_4] : memref<49x32xbf16, #tpu.memory_space<vmem>>, vector<49x32xbf16>
    %cst = arith.constant dense<0.000000e+00> : vector<64x32xf32>
    %5 = tpu.matmul %3, %4, %cst {dimension_numbers = #tpu.dot_dimension_numbers<[1], [0], [0], [1], [0, 0, 1, 1], [], []>} : vector<64x49xbf16>, vector<49x32xbf16>, vector<64x32xf32> -> vector<64x32xf32>
    %c0_5 = arith.constant 0 : index
    %c0_6 = arith.constant 0 : index
    %6 = vector.load %arg5[%c0_5, %c0_6] : memref<1x32xf32, #tpu.memory_space<vmem>>, vector<1x32xf32>
    %7 = vector.broadcast %6 : vector<1x32xf32> to vector<64x32xf32>
    %8 = arith.addf %5, %7 : vector<64x32xf32>
    %c0_7 = arith.constant 0 : index
    %c0_8 = arith.constant 0 : index
    %c0_9 = arith.constant 0 : index
    %9 = vector.load %arg3[%c0_7, %c0_8, %c0_9] : memref<1x16x22xf32, #tpu.memory_space<vmem>>, vector<1x16x22xf32>
    %10 = vector.shape_cast %9 : vector<1x16x22xf32> to vector<16x22xf32>
    %c0_10 = arith.constant 0 : index
    %c0_11 = arith.constant 0 : index
    %11 = vector.load %arg6[%c0_10, %c0_11] : memref<22x32xf32, #tpu.memory_space<vmem>>, vector<22x32xf32>
    %cst_12 = arith.constant dense<0.000000e+00> : vector<16x32xf32>
    %12 = tpu.matmul %10, %11, %cst_12 {dimension_numbers = #tpu.dot_dimension_numbers<[1], [0], [0], [1], [0, 0, 1, 1], [], []>} : vector<16x22xf32>, vector<22x32xf32>, vector<16x32xf32> -> vector<16x32xf32>
    %c0_13 = arith.constant 0 : index
    %c0_14 = arith.constant 0 : index
    %13 = vector.load %arg7[%c0_13, %c0_14] : memref<1x32xf32, #tpu.memory_space<vmem>>, vector<1x32xf32>
    %14 = vector.broadcast %13 : vector<1x32xf32> to vector<16x32xf32>
    %15 = arith.addf %12, %14 : vector<16x32xf32>
    %16 = vector.shape_cast %8 : vector<64x32xf32> to vector<4x16x32xf32>
    %17 = vector.shape_cast %15 : vector<16x32xf32> to vector<1x16x32xf32>
    %18 = vector.broadcast %17 : vector<1x16x32xf32> to vector<4x16x32xf32>
    %19 = arith.addf %16, %18 : vector<4x16x32xf32>
    %c0_15 = arith.constant 0 : index
    %c0_16 = arith.constant 0 : index
    %c0_17 = arith.constant 0 : index
    %c0_18 = arith.constant 0 : index
    %20 = vector.load %arg8[%c0_15, %c0_16, %c0_17, %c0_18] : memref<1x4x16x32xf32, #tpu.memory_space<vmem>>, vector<1x4x16x32xf32>
    %21 = vector.shape_cast %20 : vector<1x4x16x32xf32> to vector<4x16x32xf32>
    %22 = vector.shape_cast %19 : vector<4x16x32xf32> to vector<1x4x16x32xf32>
    tpu.vector_store %arg8[%c0_15, %c0_16, %c0_17, %c0_18], %22 {strides = array<i32>} : memref<1x4x16x32xf32, #tpu.memory_space<vmem>>, vector<1x4x16x32xf32>,
    return
  }
  func.func @transform_0(%arg0: i32, %arg1: i32) -> (i32, i32, i32, i32) {
    %c0_i32 = arith.constant 0 : i32
    %c0_i32_0 = arith.constant 0 : i32
    %c0_i32_1 = arith.constant 0 : i32
    return %arg0, %arg1, %c0_i32, %c0_i32_0 : i32, i32, i32, i32
  }
  func.func @transform_1(%arg0: i32, %arg1: i32) -> (i32, i32, i32) {
    %c0_i32 = arith.constant 0 : i32
    %c0_i32_0 = arith.constant 0 : i32
    %c0_i32_1 = arith.constant 0 : i32
    return %arg0, %c0_i32, %c0_i32_0 : i32, i32, i32
  }
  func.func @transform_2(%arg0: i32, %arg1: i32) -> (i32, i32) {
    %c0_i32 = arith.constant 0 : i32
    %c0_i32_0 = arith.constant 0 : i32
    %c0_i32_1 = arith.constant 0 : i32
    return %c0_i32, %c0_i32_0 : i32, i32
  }
  func.func @transform_3(%arg0: i32, %arg1: i32) -> (i32, i32) {
    %c0_i32 = arith.constant 0 : i32
    %c0_i32_0 = arith.constant 0 : i32
    %c0_i32_1 = arith.constant 0 : i32
    return %c0_i32, %c0_i32_0 : i32, i32
  }
  func.func @transform_4(%arg0: i32, %arg1: i32) -> (i32, i32) {
    %c0_i32 = arith.constant 0 : i32
    %c0_i32_0 = arith.constant 0 : i32
    %c0_i32_1 = arith.constant 0 : i32
    return %c0_i32, %c0_i32_0 : i32, i32
  }
  func.func @transform_5(%arg0: i32, %arg1: i32) -> (i32, i32) {
    %c0_i32 = arith.constant 0 : i32
    %c0_i32_0 = arith.constant 0 : i32
    %c0_i32_1 = arith.constant 0 : i32
    return %c0_i32, %c0_i32_0 : i32, i32
  }
  func.func @transform_6(%arg0: i32, %arg1: i32) -> (i32, i32, i32, i32) {
    %c0_i32 = arith.constant 0 : i32
    %c0_i32_0 = arith.constant 0 : i32
    %c0_i32_1 = arith.constant 0 : i32
    return %arg0, %arg1, %c0_i32, %c0_i32_0 : i32, i32, i32, i32
  }
}

</mosaic_0001>

<bundles_post_ra>
// kernel: tpu_custom_call.1
= control target key start
LH: loop header
LB: loop body
LE: loop exit
PB: predicated region body
PF: predicated region fallthrough
CT: control target
= control target key end

     0   :  { %11 = vsyncpa [#allocation3], 0  ;;  %s1219_s0 = inlined_call_operand.hbm [shape: f32[2,4,16,49], index: 0, kind: input, shape index: {}]   ;;  %s1220_s1 = inlined_call_operand.vmem [shape: f32[2,16,22], index: 1, kind: input, shape index: {}]   ;;  %s1221_s2 = inlined_call_operand.vmem [shape: bf16[49,32], index: 2, kind: input, shape index: {}]   ;;  %s1222_s3 = inlined_call_operand.vmem [shape: f32[1,32], index: 3, kind: input, shape index: {}]   ;;  %s1223_s4 = inlined_call_operand.vmem [shape: f32[22,32], index: 4, kind: input, shape index: {}]   ;;  %s1224_s5 = inlined_call_operand.vmem [shape: f32[1,32], index: 5, kind: input, shape index: {}]   ;;  %s1225_s6 = inlined_call_operand.hbm [shape: f32[2,4,16,32], index: 6, kind: output, shape index: {}]  }
   0x1   :  { %13 = vsyncpa [#allocation3 + $0x1], 0 }
   0x2   :  { %14 = vsyncpa [#allocation4], 0 }
   0x3   :  { %16 = vsyncpa [#allocation4 + $0x1], 0  ;;  %s984_s21 = smov 0   ;;  %s986_s22 = smov 0  }
   0x4   :  { %s988_s23 = smov 0   ;;  %s990_s24 = smov 0  }
   0x5   :  { %s992_s25 = smov 0   ;;  %s994_s26 = smov 0  }
   0x6 LB: > { %s674_s27 = sadd.s32 4294967295, %s940_s26   ;;  %s675_s28 = sadd.s32 4294967294, %s940_s26   ;;  %s940_s26 = sphi %s994_s26, %s22_s26   ;;  %s936_s25 = sphi %s992_s25, %s1240_s25   ;;  %s932_s24 = sphi %s990_s24, %s1239_s24   ;;  %s928_s23 = sphi %s988_s23, %s1238_s23   ;;  %s924_s22 = sphi %s986_s22, %s1237_s22   ;;  %s920_s21 = sphi %s984_s21, %s1236_s21  }
   0x7   : > { %s34_s29 = sadd.s32 1, %s936_s25  ;;  %s43_s30 = sadd.s32 1, %s928_s23 }
   0x8   : > { %p36_p0 = scmp.ge.s32.totalorder %s34_s29, 2  ;;  %p50_p1 = scmp.ne.s32.totalorder %s928_s23, %s924_s22 }
   0x9   : > { %p51_p2 = scmp.eq.s32.totalorder %s940_s26, 0  ;;  %p56_p3 = scmp.ne.s32.totalorder %s924_s22, %s920_s21 }
   0xa   : > { %s1242_s29 = smov (%p36_p0, %s34_s29), 0  ;;  %p57_p5 = scmp.eq.s32.totalorder %s674_s27, 0 }
   0xb   : > { %p1025_p4 = por %p51_p2, %p50_p1  ;;  %s38_s8 = ssub.s32 %s936_s25, %s1242_s29 }
   0xc   : > { %p192_p6 = scmp.eq.s32.totalorder %s674_s27, 1  ;;  %p41_p7 = scmp.eq.s32.totalorder %s38_s8, 0 }
   0xd   : > { %p1031_p8 = por %p57_p5, %p56_p3  ;;  %p198_p10 = scmp.eq.s32.totalorder %s675_s28, 1 }
   0xe   : > { %p1035_p9 = por %p192_p6, %p50_p1  ;;  %p769_p13 = scmp.lt.s32.totalorder %s940_s26, 2 }
   0xf   : > { %s1040_s11 = scalar_select %p41_p7, %s928_s23, %s43_s30  }
  0x10   : > { %s1229_s10 = scalar_select %p1035_p9, 1, 0 }
  0x11   : > { %p1042_p11 = por %p198_p10, %p56_p3  ;;  %s230_s13 = sand.u32 1, %s928_s23  }
  0x12   : > { %s678_s14 = sshll.u32 %s230_s13, 6  ;;  %s704_s15 = sshll.u32 %s936_s25, 10 }
  0x13   : > { %s1230_s12 = scalar_select %p1042_p11, 1, 0 }
  0x14   : > { %s1053_s18 = scalar_lea.hbm %s1219_s0, %s704_s15  ;;  %s234_s19 = scalar_lea.vmem [#allocation2], %s678_s14 }
  0x15   : > { %s244_s20 = sshll.u32 %s234_s19, 4  ;;  %p1059_p0 = pnand %p769_p13, %p1025_p4  ;;  %s1055_s20 = int_to_ptr.vmem [resolvable:$true] %s244_s20 }
  0x16   : > { %s1064_s28 = scalar_lea.sflag [#allocation3], %s230_s13  ;;  %s828_s30 = scalar_lea.hbm %s1053_s18, 1024 }
  0x17   : > { %p829_p2 = scmp.ne.s32.totalorder %s1053_s18, %s828_s30  ;;  %p830_p3 = pneg %p1059_p0 }
  0x18   : > { %s833_s7 = scalar_lea.hbm %s1219_s0, 2048  ;;  %p834_p4 = scmp.lt.u32.totalorder %s1053_s18, %s1219_s0 }
  0x19   : > { %p831_p5 = pnand %p830_p3, %p829_p2  ;;  %p835_p7 = scmp.lt.u32.totalorder %s833_s7, %s828_s30 }
  0x1a   : > { %p837_p13 = scmp.lt.u32.totalorder %s828_s30, %s1053_s18 }
  0x1b   : > { %p832_p6 = pneg %p831_p5  ;;  %p836_p10 = por %p835_p7, %p834_p4 }
  0x1d   : > { %p838_p12 = por %p837_p13, %p836_p10 }
  0x1f   : > { %p839_p1 = pnand %p838_p12, %p832_p6 }
  0x21   : > { %842 = shalt.err (!%p839_p1)
}
  0x22   : > { %s843_s13 = scalar_lea.vmem %s1055_s20, 1024  ;;  %s942_s17 = smov [#allocation2]  }
  0x23   : > { %p844_p2 = scmp.ne.s32.totalorder %s1055_s20, %s843_s13  ;;  %s848_s19 = sshll.u32 %s942_s17, 4  ;;  %s849_s19 = int_to_ptr.vmem [resolvable:$false] %s848_s19 }
  0x24   : > { %s850_s8 = scalar_lea.vmem %s849_s19, 2048  ;;  %p851_p9 = scmp.lt.s32.totalorder %s1055_s20, %s849_s19 }
  0x25   : > { %p846_p5 = pnand %p844_p2, %p830_p3  ;;  %p852_p4 = scmp.lt.s32.totalorder %s850_s8, %s843_s13 }
  0x27   : > { %p847_p11 = pneg %p846_p5  ;;  %p853_p7 = por %p852_p4, %p851_p9 }
  0x29   : > { %p854_p10 = pnand %p853_p7, %p847_p11 }
  0x2b   : > { %857 = shalt.err (!%p854_p10)
}
  0x2c   : > { %s943_s30 = smov 128   ;;  %s944_s14 = smov 8  }
  0x2d   : > { %764 = dma.hbm_to_vmem [thread:$0]  (!%p1059_p0), %s1053_s18, 1024, %s1055_s20, %s1064_s28, %s943_s30, %s943_s30, %s944_s14  }
  0x2e   : > { %p260_p12 = scmp.lt.s32.totalorder %s940_s26, 3  ;;  %p1232_p1 = scmp.ge.s32.totalorder %s940_s26, 1 }
  0x30   : > { %p261_p3 = pnand %p1232_p1, %p260_p12 }
  0x31   : > { %s1096_s7 = sand.u32 (!%p261_p3), 1, %s924_s22  }
  0x32   : > { %264 = sbr.rel (%p261_p3) target bundleno = 317 (0x13d), region = 44  ;;  %s682_s15 = sshll.u32 (!%p261_p3), %s1096_s7, 6 }
  0x33   : > { %s267_s16 = scalar_lea.sflag (!%p261_p3), [#allocation3], %s1096_s7  ;;  %s1102_s13 = scalar_lea.vmem (!%p261_p3), [#allocation2], %s682_s15 }
  0x39   : > { %911 = dma.done.wait (%p1031_p8), %s267_s16, 1024  }
  0x3a   : > { %913 = vsyncadd (%p1031_p8), %s267_s16, 4294966272  ;;  %v824_v0 = vld [vmem:[%s1221_s2] sm:$0xff]   ;;  %v825_v1 = vld [vmem:[%s1221_s2 + $0x8] sm:$0xff]   ;;  %vm372_vm0 = vcmask 1040384   ;;  %p305_p9 = scmp.lt.s32.totalorder %s932_s24, 1  ;;  %v945_v6 = vmov 0  }
  0x3b   : > { %749 = vmatprep.subr.bf16.mxu1 %v824_v0  ;;  %720 = vmatprep.subr.bf16.mxu0 %v824_v0  ;;  %v316_v2 = vld [vmem:[%s1102_s13 + $0x20] sm:$0xff]  ;;  %v826_v3 = vld [vmem:[%s1221_s2 + $0x10] sm:$0xff]   ;;  %v827_v4 = vld [vmem:[%s1221_s2 + $0x18] ss:$0 sps:$4 sm:$0x11]   ;;  %v374_v7 = vsel %vm372_vm0, 65535, %v945_v6 }
  0x3c   : > { %753 = vmatpush3.bf16.msra.mxu1 %v824_v0  ;;  %721 = vmatpush3.bf16.msra.mxu0 %v824_v0  ;;  %v317_v5 = vld [vmem:[%s1102_s13 + $0x28] sm:$0xff]  ;;  %v312_v9 = vld [vmem:[%s1102_s13] sm:$0xff]  ;;  %vm359_vm1 = vcmask 400384   ;;  %s306_s30 = scalar_select %p305_p9, %s932_s24, 1  ;;  %v376_v12 = vand.u32 %v827_v4, %v374_v7  ;;  %v318_v15 = vld [vmem:[%s1102_s13 + $0x30] sm:$0xff]  ;;  %vm455_vm2 = vcmask 179200  }
  0x3d   : > { %750 = vmatprep.subr.bf16.mxu1 %v825_v1  ;;  %722 = vmatprep.subr.bf16.mxu0 %v825_v1  ;;  %v322_v8 = vpack.c.bf16 %v317_v5, %v316_v2  ;;  %v313_v10 = vld [vmem:[%s1102_s13 + $0x8] sm:$0xff]  ;;  %v445_v13 = vld [vmem:[%s1223_s4] sm:$0xff]  ;;  %v319_v16 = vld [vmem:[%s1102_s13 + $0x38] sm:$0xff]  ;;  %vm462_vm3 = vcmask 1045504   ;;  %vm549_vm4 = vcmask 261120   ;;  %s706_s18 = sshll.u32 %s932_s24, 10 }
  0x3e   : > { %v320_v11 = vpack.c.bf16 %v313_v10, %v312_v9  ;;  %v446_v14 = vld [vmem:[%s1223_s4 + $0x8] sm:$0xff]  ;;  %s705_s27 = sshll.u32 %s306_s30, 4  ;;  %v314_v17 = vld [vmem:[%s1102_s13 + $0x10] sm:$0xff]  ;;  %v315_v18 = vld [vmem:[%s1102_s13 + $0x18] sm:$0xff]  ;;  %v323_v20 = vpack.c.bf16 %v319_v16, %v318_v15  ;;  %s303_s20 = scalar_lea.vmem [#allocation5], %s682_s15 }
  0x3f   : > { %732 = vmatprep.mubr.msk.bf16.mxu1 %vm359_vm1, %v322_v8  ;;  %v745_v19 = vpack.c.bf16 %v446_v14, %v445_v13  ;;  %s309_s17 = scalar_lea.vmem %s1220_s1, %s705_s27  ;;  %v321_v21 = vpack.c.bf16 %v315_v18, %v314_v17  ;;  %v447_v23 = vld [vmem:[%s1223_s4 + $0x10] sm:$0x3f]  ;;  %v686_v33 = vld [vmem:[%s1222_s3] ss:$0 sm:$0xff]  ;;  %s575_s27 = sshll.u32 %s303_s20, 4  ;;  %s1162_s27 = int_to_ptr.vmem [resolvable:$true] %s575_s27 }
  0x40   : > { %754 = vmatpush3.bf16.msra.mxu1 %v825_v1  ;;  %723 = vmatpush3.bf16.msra.mxu0 %v825_v1  ;;  %v443_v22 = vld [vmem:[%s309_s17] sm:$0xff]  ;;  %v444_v24 = vld [vmem:[%s309_s17 + $0x8] sm:$0xff]  ;;  %s1160_s24 = scalar_lea.hbm %s1225_s6, %s706_s18  ;;  %s559_s15 = scalar_lea.sflag [#allocation4], %s1096_s7 }
  0x41   : > { %751 = vmatprep.subr.bf16.mxu1 %v826_v3  ;;  %724 = vmatprep.subr.bf16.mxu0 %v826_v3  ;;  %v695_v34 = vld [vmem:[%s1224_s5] ss:$0 sm:$0xff]  ;;  %s858_s17 = scalar_lea.vmem %s1162_s27, 1024  ;;  %p1233_p11 = scmp.ne.s32.totalorder %s1229_s10, 0 }
  0x42   : > { %728 = vmatprep.mubr.msk.bf16.mxu0 %vm359_vm1, %v320_v11  ;;  %p859_p8 = scmp.ne.s32.totalorder %s1162_s27, %s858_s17  ;;  %s946_s19 = smov [#allocation5]  }
  0x43   : > { %s862_s8 = sshll.u32 %s946_s19, 4  ;;  %s863_s8 = int_to_ptr.vmem [resolvable:$false] %s862_s8 }
  0x44   : > { %755 = vmatpush3.bf16.msra.mxu1 %v826_v3  ;;  %725 = vmatpush3.bf16.msra.mxu0 %v826_v3  ;;  %p860_p0 = pnand %p859_p8, %p1233_p11  ;;  %s864_s13 = scalar_lea.vmem %s863_s8, 2048 }
  0x45   : > { %752 = vmatprep.subr.bf16.mxu1 %v376_v12  ;;  %726 = vmatprep.subr.bf16.mxu0 %v376_v12  ;;  %p865_p13 = scmp.lt.s32.totalorder %s1162_s27, %s863_s8  ;;  %p866_p2 = scmp.lt.s32.totalorder %s864_s13, %s858_s17 }
  0x46   : > { %p861_p6 = pneg %p860_p0 }
  0x47   : > { %p867_p5 = por %p866_p2, %p865_p13 }
  0x48   : > { %756 = vmatpush3.bf16.msra.mxu1 %v376_v12  ;;  %727 = vmatpush3.bf16.msra.mxu0 %v376_v12 }
  0x49   : > { %746 = vmatprep.subr.bf16.mxu1 %v745_v19  ;;  %p868_p4 = pnand %p867_p5, %p861_p6 }
  0x4b   : > { %733 = vmatmul.mubr.msk.bf16.vlgmr.msra.gmra.mrb[0].mxu1 %vm359_vm1, %v323_v20  ;;  %729 = vmatmul.mubr.msk.bf16.vlgmr.msra.gmra.mrb[0].mxu0 %vm359_vm1, %v321_v21 }
  0x4c   : > { %748 = vmatpush3.bf16.msra.mxu1 %v745_v19  ;;  %742 = vmatprep.mubr.msk.f32.mxu1 %vm455_vm2, %v443_v22 }
  0x4d   : > { %740 = vmatprep.subr.msk.mxu1 %vm462_vm3, %v447_v23 }
  0x50   : > { %741 = vmatpush3.msk.msra.mxu1 %vm462_vm3, %v447_v23 }
  0x53   : > { %743 = vmatmul.mubr.msk.f32.vlgmr.msra.gmra.mrb[4].mxu1 %vm455_vm2, %v444_v24 }
 0x11e   : > { %v734_v25 = vpop.f32.mrb[0].mxu1  ;;  %v730_v26 = vpop.f32.mrb[0].mxu0 }
 0x11f   : > { %v428_v27 = vpop.f32.mrb[1].mxu1  ;;  %v412_v28 = vpop.f32.mrb[1].mxu0  ;;  %v437_v35 = vadd.f32 %v734_v25, %v686_v33  ;;  %v421_v44 = vadd.f32 %v730_v26, %v686_v33 }
 0x120   : > { %v735_v29 = vpop.f32.mrb[2].mxu1  ;;  %v731_v30 = vpop.f32.mrb[2].mxu0  ;;  %v429_v43 = vadd.f32 %v686_v33, %v428_v27  ;;  %v413_v45 = vadd.f32 %v686_v33, %v412_v28 }
 0x121   : > { %v431_v31 = vpop.f32.mrb[3].mxu1  ;;  %v415_v32 = vpop.f32.mrb[3].mxu0  ;;  %v440_v36 = vadd.f32 %v735_v29, %v686_v33  ;;  %v424_v39 = vadd.f32 %v731_v30, %v686_v33 }
 0x122   : > { %v432_v38 = vadd.f32 %v686_v33, %v431_v31  ;;  %v416_v40 = vadd.f32 %v686_v33, %v415_v32 }
 0x126   : > { %v744_v37 = vpop.f32.mrb[4].mxu1 }
 0x127   : > { %v538_v41 = vadd.f32 %v744_v37, %v695_v34  ;;  %v532_v42 = vpop.f32.mrb[5].mxu1 }
 0x128   : > { %v533_v46 = vadd.f32 %v695_v34, %v532_v42 }
 0x129   : > { %v542_v47 = vadd.f32 %v538_v41, %v416_v40  ;;  %v544_v48 = vadd.f32 %v538_v41, %v424_v39  ;;  %v546_v49 = vadd.f32 %v538_v41, %v432_v38  ;;  %v548_v50 = vadd.f32 %v538_v41, %v440_v36 }
 0x12a   : > { %v541_v51 = vadd.f32 %v533_v46, %v413_v45  ;;  %v543_v52 = vadd.f32 %v533_v46, %v421_v44  ;;  %v545_v53 = vadd.f32 %v533_v46, %v429_v43  ;;  %v547_v54 = vadd.f32 %v533_v46, %v437_v35 }
 0x12b   : > { %551 = vst.msk [vmem:[%s303_s20 + $0x8] sm:$0xff] %vm549_vm4, %v542_v47  ;;  %553 = vst.msk [vmem:[%s303_s20 + $0x18] sm:$0xff] %vm549_vm4, %v544_v48 }
 0x12c   : > { %555 = vst.msk [vmem:[%s303_s20 + $0x28] sm:$0xff] %vm549_vm4, %v546_v49  ;;  %557 = vst.msk [vmem:[%s303_s20 + $0x38] sm:$0xff] %vm549_vm4, %v548_v50 }
 0x12d   : > { %550 = vst.msk [vmem:[%s303_s20] sm:$0xff] %vm549_vm4, %v541_v51  ;;  %552 = vst.msk [vmem:[%s303_s20 + $0x10] sm:$0xff] %vm549_vm4, %v543_v52 }
 0x12e   : > { %554 = vst.msk [vmem:[%s303_s20 + $0x20] sm:$0xff] %vm549_vm4, %v545_v53  ;;  %556 = vst.msk [vmem:[%s303_s20 + $0x30] sm:$0xff] %vm549_vm4, %v547_v54 }
 0x12f   : > { %871 = shalt.err (!%p868_p4)
}
 0x130   : > { %s872_s30 = scalar_lea.hbm %s1160_s24, 1024  ;;  %s876_s18 = scalar_lea.hbm %s1225_s6, 2048 }
 0x131   : > { %p873_p7 = scmp.ne.s32.totalorder %s1160_s24, %s872_s30  ;;  %p877_p1 = scmp.lt.u32.totalorder %s1160_s24, %s1225_s6 }
 0x132   : > { %p878_p3 = scmp.lt.u32.totalorder %s876_s18, %s872_s30  ;;  %p880_p8 = scmp.lt.u32.totalorder %s872_s30, %s1160_s24 }
 0x133   : > { %p874_p10 = pnand %p873_p7, %p1233_p11 }
 0x134   : > { %p879_p9 = por %p878_p3, %p877_p1 }
 0x135   : > { %p875_p12 = pneg %p874_p10 }
 0x136   : > { %p881_p0 = por %p880_p8, %p879_p9 }
 0x138   : > { %p882_p6 = pnand %p881_p0, %p875_p12 }
 0x13a   : > { %885 = shalt.err (!%p882_p6)
}
 0x13b   : > { %s947_s9 = smov 128   ;;  %s948_s17 = smov 8  }
 0x13c   : > { %759 = dma.vmem_to_hbm [thread:$0]  (%p1233_p11), %s1162_s27, 1024, %s1160_s24, %s559_s15, %s947_s9, %s947_s9, %s948_s17  }
 0x13d PF: > { %s590_s19 = sand.u32 1, %s920_s21   ;;  %p1234_p13 = scmp.ne.s32.totalorder %s1230_s12, 0 }
 0x13e   : > { %p1235_p2 = scmp.ge.s32.totalorder %s940_s26, 2  ;;  %s591_s8 = scalar_lea.sflag [#allocation4], %s590_s19 }
 0x140   : > { %p766_p5 = pnand %p1235_p2, %p1234_p13 }
 0x142   : > { %915 = dma.done.wait (!%p766_p5), %s591_s8, 1024  }
 0x143   : > { %917 = vsyncadd (!%p766_p5), %s591_s8, 4294966272  ;;  %s22_s26 = sadd.s32 1, %s940_s26   ;;  %s1236_s21 = smov %s924_s22 }
 0x144   : > { %p19_p4 = scmp.ge.s32.totalorder %s22_s26, 4   ;;  %s1237_s22 = smov %s928_s23 }
 0x145   : > { %s1238_s23 = smov %s1040_s11  ;;  %s1239_s24 = smov %s936_s25 }
 0x146   : > { %s1240_s25 = smov %s1242_s29  ;;  %21 = sbr.rel (!%p19_p4) target bundleno = 6 (0x6), region = 92 }
 0x14d   :  { %596 = vsyncpa [#allocation3], 1 }
 0x14e   :  { %598 = vsyncpa [#allocation3 + $0x1], 1 }
 0x14f   :  { %599 = vsyncpa [#allocation4], 1 }
 0x150   :  { %601 = vsyncpa [#allocation4 + $0x1], 1 }

</bundles_post_ra>
